<compile_context>
chip_gen: v7x
topology: tpu7x:2x2x1
jax: 0.10.0
libtpu: 0.0.40
codegen_flags: <defaults>
</compile_context>

<pallas_src>
import jax
import jax.numpy as jnp
from jax.experimental import pallas as pl
from jax.experimental.pallas import tpu as pltpu


# Wider lane-dense slabs -> fewer rows, larger contiguous DMA bursts.
_LANE_CANDIDATES = (32768, 16384, 8192, 4096, 2048, 1024, 512, 256, 128)
# Fan the copy out over at most this many concurrent DMAs...
_MAX_DMA_CHUNKS = 8
# ...but only when each chunk stays reasonably large; tiny arrays get 1 DMA.
_MIN_BYTES_PER_CHUNK = 256 * 1024


def _copy_kernel_factory(chunks):
    """Build an HBM->HBM DMA copy kernel for static row `chunks`."""

    def kernel(x_hbm, o_hbm, sems):
        # Pure DMA copy: no VMEM staging, no vector loads/stores.
        copies = []
        for c, (start, size) in enumerate(chunks):
            cp = pltpu.make_async_copy(
                x_hbm.at[pl.ds(start, size), :],
                o_hbm.at[pl.ds(start, size), :],
                sems.at[c],
            )
            cp.start()
            copies.append(cp)
        for cp in copies:
            cp.wait()

    return kernel


def _unsqueezed_shape(shape, dim_list):
    """Apply torch-style unsqueeze dims sequentially to a shape tuple."""
    shape = tuple(shape)
    for dim in dim_list:
        ndim = len(shape)
        # torch.unsqueeze accepts dim in [-(ndim+1), ndim]
        d = dim if dim >= 0 else dim + ndim + 1
        assert 0 <= d <= ndim, f"invalid unsqueeze dim {dim} for ndim {ndim}"
        shape = shape[:d] + (1,) + shape[d:]
    return shape


def _choose_lanes(total):
    """Largest lane width (multiple of 128) that evenly divides `total`."""
    for lanes in _LANE_CANDIDATES:
        if total % lanes == 0:
            return lanes
    return None


def _chunk_rows(rows, lanes, itemsize):
    """Static (start, size) row chunks for the chunked HBM->HBM DMA copy."""
    total_bytes = rows * lanes * itemsize
    n = min(_MAX_DMA_CHUNKS, rows, max(1, total_bytes // _MIN_BYTES_PER_CHUNK))
    n = max(1, n)
    base, rem = divmod(rows, n)
    chunks = []
    start = 0
    for c in range(n):
        size = base + (1 if c < rem else 0)
        if size == 0:
            continue
        chunks.append((start, size))
        start += size
    return tuple(chunks)


def _pallas_identity_2d(x2d):
    """Identity copy of a lane-dense 2-D array via chunked HBM->HBM DMAs."""
    rows, lanes = x2d.shape
    itemsize = jnp.dtype(x2d.dtype).itemsize
    chunks = _chunk_rows(rows, lanes, itemsize)
    kernel = _copy_kernel_factory(chunks)

    return pl.pallas_call(
        kernel,
        out_shape=jax.ShapeDtypeStruct(x2d.shape, x2d.dtype),
        in_specs=[pl.BlockSpec(memory_space=pl.ANY)],
        out_specs=pl.BlockSpec(memory_space=pl.ANY),
        scratch_shapes=[pltpu.SemaphoreType.DMA((len(chunks),))],
        cost_estimate=pl.CostEstimate(
            flops=0,
            transcendentals=0,
            bytes_accessed=2 * rows * lanes * itemsize,
        ),
    )(x2d)


def unsqueeze_forward(x, dim_list, use_kernel=True):
    """Equivalent of Unsqueeze(dim_list).forward(x).

    use_kernel=False is the recommended production path (metadata-only
    reshape, zero data movement).  use_kernel=True routes the data through a
    DMA-engine HBM->HBM identity copy (no VMEM staging).
    """
    new_shape = _unsqueezed_shape(x.shape, dim_list)

    if not use_kernel:
        return jnp.reshape(x, new_shape)

    total = int(x.size)
    lanes = _choose_lanes(total)
    if lanes is None or total == 0:
        # Odd element counts / empty tensors: no lane-dense view possible;
        # fall back to the zero-cost metadata-only path.
        return jnp.reshape(x, new_shape)

    x2d = jnp.reshape(x, (total // lanes, lanes))
    y2d = _pallas_identity_2d(x2d)
    return jnp.reshape(y2d, new_shape)


if __name__ == "__main__":
    key = jax.random.PRNGKey(0)
    # Small NCHW input consistent with typical conv-style usage.
    x = jax.random.normal(key, (2, 4, 16, 16), dtype=jnp.float32)

    dim_list = [0, 2]  # matches Unsqueeze(dim_list=[0, 2])

    # Kernel-backed path (single HBM->HBM DMA for this small input).
    out = unsqueeze_forward(x, dim_list, use_kernel=True)
    out = jax.block_until_ready(out)

    # (2,4,16,16) -unsq0-> (1,2,4,16,16) -unsq2-> (1,2,1,4,16,16)
    expected_shape = (1, 2, 1, 4, 16, 16)
    assert out.shape == expected_shape, (out.shape, expected_shape)
    assert out.dtype == x.dtype
    assert bool(jnp.all(out.reshape(x.shape) == x))

    # Recommended zero-copy production path must agree.
    out_ref = jax.block_until_ready(
        unsqueeze_forward(x, dim_list, use_kernel=False)
    )
    assert out_ref.shape == expected_shape
    assert bool(jnp.all(out_ref == out))

    # Multi-chunk DMA path (1 MiB -> several concurrent HBM->HBM copies).
    x_big = jax.random.normal(key, (16, 128, 128), dtype=jnp.float32)
    y_big = jax.block_until_ready(unsqueeze_forward(x_big, [1]))
    assert y_big.shape == (16, 1, 128, 128)
    assert bool(jnp.all(y_big.reshape(x_big.shape) == x_big))

    # Robustness: odd element count (falls back to reshape) and 1-D input.
    x_odd = jax.random.normal(key, (3, 5, 7), dtype=jnp.float32)
    y_odd = jax.block_until_ready(unsqueeze_forward(x_odd, [-1, 0]))
    assert y_odd.shape == (1, 3, 5, 7, 1)
    assert bool(jnp.all(y_odd.reshape(x_odd.shape) == x_odd))

    x_1d = jax.random.normal(key, (256,), dtype=jnp.float32)
    y_1d = jax.block_until_ready(unsqueeze_forward(x_1d, [0]))
    assert y_1d.shape == (1, 256)
    assert bool(jnp.all(y_1d.reshape(x_1d.shape) == x_1d))

    print("KERNEL_OK")
</pallas_src>

<mosaic_0001>
module attributes {stable_mosaic.version = 11 : i64} {
  func.func @kernel(%arg0: memref<1x2048xf32, #tpu.memory_space<any>>, %arg1: memref<1x2048xf32, #tpu.memory_space<any>>, %arg2: memref<1x!tpu.dma_semaphore, #tpu.memory_space<semaphore_mem>>) attributes {dimension_semantics = [], scalar_prefetch = 0 : i64, scratch_operands = 1 : i64, tpu.core_type = #tpu.core_type<tc>} {
    %c0_i32 = arith.constant 0 : i32
    %c0_i32_0 = arith.constant 0 : i32
    %c0_i32_1 = arith.constant 0 : i32
    %0 = tpu.memref_slice %arg0[%c0_i32_0, %c0_i32_1] : memref<1x2048xf32, #tpu.memory_space<any>> -> memref<1x2048xf32, #tpu.memory_space<any>>
    %c0_i32_2 = arith.constant 0 : i32
    %c0_i32_3 = arith.constant 0 : i32
    %1 = tpu.memref_slice %arg1[%c0_i32_2, %c0_i32_3] : memref<1x2048xf32, #tpu.memory_space<any>> -> memref<1x2048xf32, #tpu.memory_space<any>>
    %2 = tpu.memref_slice %arg2[%c0_i32] : memref<1x!tpu.dma_semaphore, #tpu.memory_space<semaphore_mem>> -> memref<1x!tpu.dma_semaphore, #tpu.memory_space<semaphore_mem>>
    %3 = tpu.memref_squeeze %2 : memref<1x!tpu.dma_semaphore, #tpu.memory_space<semaphore_mem>> -> memref<!tpu.dma_semaphore, #tpu.memory_space<semaphore_mem>>
    tpu.enqueue_dma source(%0 : memref<1x2048xf32, #tpu.memory_space<any>>) target(%1 : memref<1x2048xf32, #tpu.memory_space<any>>) target_semaphore(%3 : memref<!tpu.dma_semaphore, #tpu.memory_space<semaphore_mem>>)
    %c0_i32_4 = arith.constant 0 : i32
    %c0_i32_5 = arith.constant 0 : i32
    %c0_i32_6 = arith.constant 0 : i32
    %4 = tpu.memref_slice %arg0[%c0_i32_5, %c0_i32_6] : memref<1x2048xf32, #tpu.memory_space<any>> -> memref<1x2048xf32, #tpu.memory_space<any>>
    %c0_i32_7 = arith.constant 0 : i32
    %c0_i32_8 = arith.constant 0 : i32
    %5 = tpu.memref_slice %arg1[%c0_i32_7, %c0_i32_8] : memref<1x2048xf32, #tpu.memory_space<any>> -> memref<1x2048xf32, #tpu.memory_space<any>>
    %6 = tpu.memref_slice %arg2[%c0_i32_4] : memref<1x!tpu.dma_semaphore, #tpu.memory_space<semaphore_mem>> -> memref<1x!tpu.dma_semaphore, #tpu.memory_space<semaphore_mem>>
    %7 = tpu.memref_squeeze %6 : memref<1x!tpu.dma_semaphore, #tpu.memory_space<semaphore_mem>> -> memref<!tpu.dma_semaphore, #tpu.memory_space<semaphore_mem>>
    tpu.wait_dma2 semaphore(%7 : memref<!tpu.dma_semaphore, #tpu.memory_space<semaphore_mem>>) src(%4 : memref<1x2048xf32, #tpu.memory_space<any>>) dst(%5 : memref<1x2048xf32, #tpu.memory_space<any>>)
    return
  }
}

</mosaic_0001>

<bundles_post_ra>
// kernel: tpu_custom_call.1
= control target key start
LH: loop header
LB: loop body
LE: loop exit
PB: predicated region body
PF: predicated region fallthrough
CT: control target
= control target key end

     0   :  { %s34_s6 = smov [#allocation2]   ;;  %s35_s7 = smov [#allocation3]   ;;  %s53_s0 = inlined_call_operand.hbm [shape: f32[1,2048], index: 0, kind: input, shape index: {}]   ;;  %s54_s1 = inlined_call_operand.hbm [shape: f32[1,2048], index: 1, kind: output, shape index: {}]  }
   0x1   :  { %s36_s8 = smov 0  }
   0x2   :  { %18 = dma.general %s53_s0, 256, %s54_s1, %s34_s6, %s35_s7, [#allocation4], %s36_s8, 0  }
   0x3   :  { %32 = dma.done.wait [#allocation2], 256 }
   0x4   :  { %33 = vsyncadd [#allocation2], 4294967040 }
   0x5   :  { %22 = vsyncmov [#allocation2] }
   0x8   :  { %s23_s13 = vpop.sfrf %22 }
   0x9   :  { %p28_p0 = scmp.ne.s32.totalorder %s23_s13, 0 }
   0xb   :  { %27 = shalt.err (%p28_p0)  }

</bundles_post_ra>
